<compile_context>
chip_gen: v7x
topology: tpu7x:2x2x1
jax: 0.10.0
libtpu: 0.0.40
codegen_flags: <defaults>
</compile_context>

<pallas_src>
import functools

import jax
import jax.numpy as jnp
from jax import lax
from jax.experimental import pallas as pl
from jax.experimental.pallas import tpu as pltpu


def _round_up(x, m):
    return (x + m - 1) // m * m


def _make_kernel(t_tile, unroll):
    """Build the per-chunk kernel; t_tile / unroll are static constants."""

    def kernel(x_ref, h0_ref, win_ref, wh_ref, b_ref, o_ref, h_scr):
        # x_ref  : (t_tile, F)   this chunk of the input sequence
        # h0_ref : (1, UP)       padded previous hidden state (call-level)
        # win_ref: (F, UP)       zero-padded input projection weights
        # wh_ref : (UP, UP)      zero-padded recurrent weights
        # b_ref  : (1, UP)       zero-padded bias
        # o_ref  : (t_tile, UP)  this chunk of padded hidden outputs
        # h_scr  : (1, UP)       VMEM carry of h across steps AND chunks

        @pl.when(pl.program_id(0) == 0)
        def _seed():
            h_scr[...] = h0_ref[...]

        # Hoisted input projection for the whole chunk: one MXU-efficient
        # (t_tile, F) @ (F, UP) matmul + bias, staged into the output block
        # with a full-tile (unmasked) store.
        o_ref[...] = (
            jnp.dot(x_ref[...], win_ref[...],
                    preferred_element_type=jnp.float32)
            + b_ref[...])

        # Serial recurrence over the chunk: the only sequential dependency is
        # the (1, UP) hidden row; each step is one small matmul + tanh.
        def step(t, h):
            z_t = o_ref[pl.ds(t, 1), :]
            h_new = jnp.tanh(
                jnp.dot(h, wh_ref[...], preferred_element_type=jnp.float32)
                + z_t)
            o_ref[pl.ds(t, 1), :] = h_new
            return h_new

        h_scr[...] = lax.fori_loop(0, t_tile, step, h_scr[...], unroll=unroll)

    return kernel


@functools.partial(jax.jit, static_argnames=("units", "t_tile"))
def _kfrnn_sequence(x_seq, h_prev, w_in_pad, w_h_pad, b_pad, *, units, t_tile):
    """x_seq: (T, F), h_prev: (U,), padded weights/bias. Returns (hs, h_last)."""
    x_seq = x_seq.astype(jnp.float32)
    T, F = x_seq.shape
    UP = w_h_pad.shape[0]

    # Pad the previous hidden state to UP lanes (padded lanes exactly zero so
    # they stay zero through the recurrence).
    h0 = jnp.zeros((1, UP), jnp.float32).at[0, :units].set(h_prev)

    # Pad T up to a multiple of the time tile.  The padded trailing steps run
    # AFTER every real step, so they cannot affect real outputs; they are
    # sliced away below.
    TP = _round_up(T, t_tile)
    if TP != T:
        x_seq = jnp.zeros((TP, F), jnp.float32).at[:T].set(x_seq)

    hs_pad = pl.pallas_call(
        _make_kernel(t_tile, unroll=min(t_tile, 8)),
        out_shape=jax.ShapeDtypeStruct((TP, UP), jnp.float32),
        grid=(TP // t_tile,),
        in_specs=[
            pl.BlockSpec((t_tile, F), lambda i: (i, 0)),   # chunked input
            pl.BlockSpec((1, UP), lambda i: (0, 0)),       # previous hidden
            pl.BlockSpec((F, UP), lambda i: (0, 0)),       # W_in (resident)
            pl.BlockSpec((UP, UP), lambda i: (0, 0)),      # W_h (resident)
            pl.BlockSpec((1, UP), lambda i: (0, 0)),       # bias (resident)
        ],
        out_specs=pl.BlockSpec((t_tile, UP), lambda i: (i, 0)),  # chunked out
        scratch_shapes=[pltpu.VMEM((1, UP), jnp.float32)],
        compiler_params=pltpu.CompilerParams(
            dimension_semantics=("arbitrary",)),           # serial recurrence
    )(x_seq, h0, w_in_pad, w_h_pad, b_pad)

    hs = hs_pad[:T, :units]          # slice inside jit (no extra dispatches)
    return hs, hs[T - 1]


class KfRNNCellPallas:
    """Mirrors the PyTorch module's stateful forward (buffer = last hidden)."""

    def __init__(self, input_features, units, key, t_tile=8):
        self.input_features = F = input_features
        self.units = U = units
        self._t_tile = t_tile
        k1, k2, k3 = jax.random.split(key, 3)
        # nn.init.uniform_(-0.1, 0.1), deterministic via PRNGKey
        self.W_in = jax.random.uniform(k1, (F, U), jnp.float32, -0.1, 0.1)
        self.W_h = jax.random.uniform(k2, (U, U), jnp.float32, -0.1, 0.1)
        self.bias = jax.random.uniform(k3, (U,), jnp.float32, -0.1, 0.1)

        # ---- one-time zero padding to lane-dense UP columns ----------------
        self._UP = UP = _round_up(U, 128)
        self._w_in_pad = (jnp.zeros((F, UP), jnp.float32)
                          .at[:, :U].set(self.W_in))
        self._w_h_pad = (jnp.zeros((UP, UP), jnp.float32)
                         .at[:U, :U].set(self.W_h))
        self._b_pad = (jnp.zeros((1, UP), jnp.float32)
                       .at[0, :U].set(self.bias))

        # Stateful hidden-state buffer (PyTorch: self.buffer).
        self._h = jnp.zeros((U,), jnp.float32)

    def forward_sequence(self, x_seq):
        """Run T recurrent steps in ONE pallas_call. x_seq: (T, F) -> (T, U)."""
        hs, h_last = _kfrnn_sequence(
            x_seq, self._h, self._w_in_pad, self._w_h_pad, self._b_pad,
            units=self.units, t_tile=self._t_tile)
        self._h = h_last
        return hs

    def forward(self, x):
        """Single-step stateful forward, matching the PyTorch module."""
        hs = self.forward_sequence(x.reshape(1, self.input_features))
        return hs[0]

    def get_hidden(self):
        return self._h


if __name__ == "__main__":
    key = jax.random.PRNGKey(0)
    k_param, k_x = jax.random.split(key)

    input_features = 16
    units = 32
    seq_len = 12          # not a multiple of t_tile=8: exercises T padding

    cell = KfRNNCellPallas(input_features, units, k_param, t_tile=8)
    x_seq = jax.random.normal(k_x, (seq_len, input_features), jnp.float32)

    # Whole sequence in a single pallas_call (hidden state carried in VMEM
    # across chunks, input projection hoisted to one matmul per chunk).
    hs = cell.forward_sequence(x_seq)
    hs = jax.block_until_ready(hs)

    # One more module-style single-step forward, continuing from the hidden
    # state left by the sequence (exercises a nonzero h_prev @ W_h path).
    h_extra = cell.forward(x_seq[0])
    h_extra = jax.block_until_ready(h_extra)

    # Pure-JAX step-by-step reference (validates the recurrent W_h path).
    def ref_step(h, x):
        h_new = jnp.tanh(x @ cell.W_in + h @ cell.W_h + cell.bias)
        return h_new, h_new

    h_final_ref, hs_ref = jax.lax.scan(
        ref_step, jnp.zeros((units,), jnp.float32), x_seq)
    h_extra_ref = jnp.tanh(
        x_seq[0] @ cell.W_in + h_final_ref @ cell.W_h + cell.bias)

    assert hs.shape == (seq_len, units)
    assert h_extra.shape == (units,)
    assert jnp.allclose(hs, hs_ref, atol=1e-4, rtol=1e-4)
    assert jnp.allclose(h_extra, h_extra_ref, atol=1e-4, rtol=1e-4)
    assert jnp.allclose(cell.get_hidden(), h_extra_ref, atol=1e-4, rtol=1e-4)

    print("KERNEL_OK")
</pallas_src>

<mosaic_0001>
module attributes {stable_mosaic.version = 11 : i64} {
  func.func @kernel(%arg0: i32, %arg1: memref<8x16xf32, #tpu.memory_space<vmem>>, %arg2: memref<1x128xf32, #tpu.memory_space<vmem>>, %arg3: memref<16x128xf32, #tpu.memory_space<vmem>>, %arg4: memref<128x128xf32, #tpu.memory_space<vmem>>, %arg5: memref<1x128xf32, #tpu.memory_space<vmem>>, %arg6: memref<8x128xf32, #tpu.memory_space<vmem>>, %arg7: memref<1x128xf32, #tpu.memory_space<vmem>>) attributes {dimension_semantics = [#tpu.dimension_semantics<arbitrary>], iteration_bounds = array<i64: 2>, scalar_prefetch = 0 : i64, scratch_operands = 1 : i64, tpu.core_type = #tpu.core_type<tc>, window_params = [{transform_indices = @transform_0, window_bounds = array<i64: 8, 16>}, {pipeline_mode = #tpu.pipeline_mode<synchronous>, transform_indices = @transform_1, window_bounds = array<i64: 1, 128>}, {pipeline_mode = #tpu.pipeline_mode<synchronous>, transform_indices = @transform_2, window_bounds = array<i64: 16, 128>}, {pipeline_mode = #tpu.pipeline_mode<synchronous>, transform_indices = @transform_3, window_bounds = array<i64: 128, 128>}, {pipeline_mode = #tpu.pipeline_mode<synchronous>, transform_indices = @transform_4, window_bounds = array<i64: 1, 128>}, {transform_indices = @transform_5, window_bounds = array<i64: 8, 128>}]} {
    %c0_i32 = arith.constant 0 : i32
    %0 = arith.cmpi eq, %arg0, %c0_i32 : i32
    %1 = arith.extui %0 : i1 to i32
    %c0_i32_0 = arith.constant 0 : i32
    %2 = arith.cmpi ne, %1, %c0_i32_0 : i32
    scf.if %2 {
      %c0_53 = arith.constant 0 : index
      %c0_54 = arith.constant 0 : index
      %76 = vector.load %arg2[%c0_53, %c0_54] : memref<1x128xf32, #tpu.memory_space<vmem>>, vector<1x128xf32>
      %c0_55 = arith.constant 0 : index
      %c0_56 = arith.constant 0 : index
      %77 = vector.load %arg7[%c0_55, %c0_56] : memref<1x128xf32, #tpu.memory_space<vmem>>, vector<1x128xf32>
      tpu.vector_store %arg7[%c0_55, %c0_56], %76 {strides = array<i32>} : memref<1x128xf32, #tpu.memory_space<vmem>>, vector<1x128xf32>,
    } else {
    }
    %c0 = arith.constant 0 : index
    %c0_1 = arith.constant 0 : index
    %3 = vector.load %arg1[%c0, %c0_1] : memref<8x16xf32, #tpu.memory_space<vmem>>, vector<8x16xf32>
    %c0_2 = arith.constant 0 : index
    %c0_3 = arith.constant 0 : index
    %4 = vector.load %arg3[%c0_2, %c0_3] : memref<16x128xf32, #tpu.memory_space<vmem>>, vector<16x128xf32>
    %cst = arith.constant dense<0.000000e+00> : vector<8x128xf32>
    %5 = tpu.matmul %3, %4, %cst {dimension_numbers = #tpu.dot_dimension_numbers<[1], [0], [0], [1], [0, 0, 1, 1], [], []>} : vector<8x16xf32>, vector<16x128xf32>, vector<8x128xf32> -> vector<8x128xf32>
    %c0_4 = arith.constant 0 : index
    %c0_5 = arith.constant 0 : index
    %6 = vector.load %arg5[%c0_4, %c0_5] : memref<1x128xf32, #tpu.memory_space<vmem>>, vector<1x128xf32>
    %7 = vector.broadcast %6 : vector<1x128xf32> to vector<8x128xf32>
    %8 = arith.addf %5, %7 : vector<8x128xf32>
    %c0_6 = arith.constant 0 : index
    %c0_7 = arith.constant 0 : index
    %9 = vector.load %arg6[%c0_6, %c0_7] : memref<8x128xf32, #tpu.memory_space<vmem>>, vector<8x128xf32>
    tpu.vector_store %arg6[%c0_6, %c0_7], %8 {strides = array<i32>} : memref<8x128xf32, #tpu.memory_space<vmem>>, vector<8x128xf32>,
    %c0_8 = arith.constant 0 : index
    %c0_9 = arith.constant 0 : index
    %10 = vector.load %arg7[%c0_8, %c0_9] : memref<1x128xf32, #tpu.memory_space<vmem>>, vector<1x128xf32>
    %c0_i32_10 = arith.constant 0 : i32
    %11 = arith.index_cast %c0_i32_10 : i32 to index
    %c0_11 = arith.constant 0 : index
    %12 = vector.load %arg6[%11, %c0_11] : memref<8x128xf32, #tpu.memory_space<vmem>>, vector<1x128xf32>
    %c0_12 = arith.constant 0 : index
    %c0_13 = arith.constant 0 : index
    %13 = vector.load %arg4[%c0_12, %c0_13] : memref<128x128xf32, #tpu.memory_space<vmem>>, vector<128x128xf32>
    %cst_14 = arith.constant dense<0.000000e+00> : vector<1x128xf32>
    %14 = tpu.matmul %10, %13, %cst_14 {dimension_numbers = #tpu.dot_dimension_numbers<[1], [0], [0], [1], [0, 0, 1, 1], [], []>} : vector<1x128xf32>, vector<128x128xf32>, vector<1x128xf32> -> vector<1x128xf32>
    %15 = arith.addf %14, %12 : vector<1x128xf32>
    %16 = math.tanh %15 : vector<1x128xf32>
    %17 = arith.index_cast %c0_i32_10 : i32 to index
    %c0_15 = arith.constant 0 : index
    %18 = vector.load %arg6[%17, %c0_15] : memref<8x128xf32, #tpu.memory_space<vmem>>, vector<1x128xf32>
    tpu.vector_store %arg6[%17, %c0_15], %16 {strides = array<i32>} : memref<8x128xf32, #tpu.memory_space<vmem>>, vector<1x128xf32>,
    %c1_i32 = arith.constant 1 : i32
    %19 = arith.index_cast %c1_i32 : i32 to index
    %c0_16 = arith.constant 0 : index
    %20 = vector.load %arg6[%19, %c0_16] : memref<8x128xf32, #tpu.memory_space<vmem>>, vector<1x128xf32>
    %c0_17 = arith.constant 0 : index
    %c0_18 = arith.constant 0 : index
    %21 = vector.load %arg4[%c0_17, %c0_18] : memref<128x128xf32, #tpu.memory_space<vmem>>, vector<128x128xf32>
    %cst_19 = arith.constant dense<0.000000e+00> : vector<1x128xf32>
    %22 = tpu.matmul %16, %21, %cst_19 {dimension_numbers = #tpu.dot_dimension_numbers<[1], [0], [0], [1], [0, 0, 1, 1], [], []>} : vector<1x128xf32>, vector<128x128xf32>, vector<1x128xf32> -> vector<1x128xf32>
    %23 = arith.addf %22, %20 : vector<1x128xf32>
    %24 = math.tanh %23 : vector<1x128xf32>
    %25 = arith.index_cast %c1_i32 : i32 to index
    %c0_20 = arith.constant 0 : index
    %26 = vector.load %arg6[%25, %c0_20] : memref<8x128xf32, #tpu.memory_space<vmem>>, vector<1x128xf32>
    tpu.vector_store %arg6[%25, %c0_20], %24 {strides = array<i32>} : memref<8x128xf32, #tpu.memory_space<vmem>>, vector<1x128xf32>,
    %c2_i32 = arith.constant 2 : i32
    %27 = arith.index_cast %c2_i32 : i32 to index
    %c0_21 = arith.constant 0 : index
    %28 = vector.load %arg6[%27, %c0_21] : memref<8x128xf32, #tpu.memory_space<vmem>>, vector<1x128xf32>
    %c0_22 = arith.constant 0 : index
    %c0_23 = arith.constant 0 : index
    %29 = vector.load %arg4[%c0_22, %c0_23] : memref<128x128xf32, #tpu.memory_space<vmem>>, vector<128x128xf32>
    %cst_24 = arith.constant dense<0.000000e+00> : vector<1x128xf32>
    %30 = tpu.matmul %24, %29, %cst_24 {dimension_numbers = #tpu.dot_dimension_numbers<[1], [0], [0], [1], [0, 0, 1, 1], [], []>} : vector<1x128xf32>, vector<128x128xf32>, vector<1x128xf32> -> vector<1x128xf32>
    %31 = arith.addf %30, %28 : vector<1x128xf32>
    %32 = math.tanh %31 : vector<1x128xf32>
    %33 = arith.index_cast %c2_i32 : i32 to index
    %c0_25 = arith.constant 0 : index
    %34 = vector.load %arg6[%33, %c0_25] : memref<8x128xf32, #tpu.memory_space<vmem>>, vector<1x128xf32>
    tpu.vector_store %arg6[%33, %c0_25], %32 {strides = array<i32>} : memref<8x128xf32, #tpu.memory_space<vmem>>, vector<1x128xf32>,
    %c3_i32 = arith.constant 3 : i32
    %35 = arith.index_cast %c3_i32 : i32 to index
    %c0_26 = arith.constant 0 : index
    %36 = vector.load %arg6[%35, %c0_26] : memref<8x128xf32, #tpu.memory_space<vmem>>, vector<1x128xf32>
    %c0_27 = arith.constant 0 : index
    %c0_28 = arith.constant 0 : index
    %37 = vector.load %arg4[%c0_27, %c0_28] : memref<128x128xf32, #tpu.memory_space<vmem>>, vector<128x128xf32>
    %cst_29 = arith.constant dense<0.000000e+00> : vector<1x128xf32>
    %38 = tpu.matmul %32, %37, %cst_29 {dimension_numbers = #tpu.dot_dimension_numbers<[1], [0], [0], [1], [0, 0, 1, 1], [], []>} : vector<1x128xf32>, vector<128x128xf32>, vector<1x128xf32> -> vector<1x128xf32>
    %39 = arith.addf %38, %36 : vector<1x128xf32>
    %40 = math.tanh %39 : vector<1x128xf32>
    %41 = arith.index_cast %c3_i32 : i32 to index
    %c0_30 = arith.constant 0 : index
    %42 = vector.load %arg6[%41, %c0_30] : memref<8x128xf32, #tpu.memory_space<vmem>>, vector<1x128xf32>
    tpu.vector_store %arg6[%41, %c0_30], %40 {strides = array<i32>} : memref<8x128xf32, #tpu.memory_space<vmem>>, vector<1x128xf32>,
    %c4_i32 = arith.constant 4 : i32
    %43 = arith.index_cast %c4_i32 : i32 to index
    %c0_31 = arith.constant 0 : index
    %44 = vector.load %arg6[%43, %c0_31] : memref<8x128xf32, #tpu.memory_space<vmem>>, vector<1x128xf32>
    %c0_32 = arith.constant 0 : index
    %c0_33 = arith.constant 0 : index
    %45 = vector.load %arg4[%c0_32, %c0_33] : memref<128x128xf32, #tpu.memory_space<vmem>>, vector<128x128xf32>
    %cst_34 = arith.constant dense<0.000000e+00> : vector<1x128xf32>
    %46 = tpu.matmul %40, %45, %cst_34 {dimension_numbers = #tpu.dot_dimension_numbers<[1], [0], [0], [1], [0, 0, 1, 1], [], []>} : vector<1x128xf32>, vector<128x128xf32>, vector<1x128xf32> -> vector<1x128xf32>
    %47 = arith.addf %46, %44 : vector<1x128xf32>
    %48 = math.tanh %47 : vector<1x128xf32>
    %49 = arith.index_cast %c4_i32 : i32 to index
    %c0_35 = arith.constant 0 : index
    %50 = vector.load %arg6[%49, %c0_35] : memref<8x128xf32, #tpu.memory_space<vmem>>, vector<1x128xf32>
    tpu.vector_store %arg6[%49, %c0_35], %48 {strides = array<i32>} : memref<8x128xf32, #tpu.memory_space<vmem>>, vector<1x128xf32>,
    %c5_i32 = arith.constant 5 : i32
    %51 = arith.index_cast %c5_i32 : i32 to index
    %c0_36 = arith.constant 0 : index
    %52 = vector.load %arg6[%51, %c0_36] : memref<8x128xf32, #tpu.memory_space<vmem>>, vector<1x128xf32>
    %c0_37 = arith.constant 0 : index
    %c0_38 = arith.constant 0 : index
    %53 = vector.load %arg4[%c0_37, %c0_38] : memref<128x128xf32, #tpu.memory_space<vmem>>, vector<128x128xf32>
    %cst_39 = arith.constant dense<0.000000e+00> : vector<1x128xf32>
    %54 = tpu.matmul %48, %53, %cst_39 {dimension_numbers = #tpu.dot_dimension_numbers<[1], [0], [0], [1], [0, 0, 1, 1], [], []>} : vector<1x128xf32>, vector<128x128xf32>, vector<1x128xf32> -> vector<1x128xf32>
    %55 = arith.addf %54, %52 : vector<1x128xf32>
    %56 = math.tanh %55 : vector<1x128xf32>
    %57 = arith.index_cast %c5_i32 : i32 to index
    %c0_40 = arith.constant 0 : index
    %58 = vector.load %arg6[%57, %c0_40] : memref<8x128xf32, #tpu.memory_space<vmem>>, vector<1x128xf32>
    tpu.vector_store %arg6[%57, %c0_40], %56 {strides = array<i32>} : memref<8x128xf32, #tpu.memory_space<vmem>>, vector<1x128xf32>,
    %c6_i32 = arith.constant 6 : i32
    %59 = arith.index_cast %c6_i32 : i32 to index
    %c0_41 = arith.constant 0 : index
    %60 = vector.load %arg6[%59, %c0_41] : memref<8x128xf32, #tpu.memory_space<vmem>>, vector<1x128xf32>
    %c0_42 = arith.constant 0 : index
    %c0_43 = arith.constant 0 : index
    %61 = vector.load %arg4[%c0_42, %c0_43] : memref<128x128xf32, #tpu.memory_space<vmem>>, vector<128x128xf32>
    %cst_44 = arith.constant dense<0.000000e+00> : vector<1x128xf32>
    %62 = tpu.matmul %56, %61, %cst_44 {dimension_numbers = #tpu.dot_dimension_numbers<[1], [0], [0], [1], [0, 0, 1, 1], [], []>} : vector<1x128xf32>, vector<128x128xf32>, vector<1x128xf32> -> vector<1x128xf32>
    %63 = arith.addf %62, %60 : vector<1x128xf32>
    %64 = math.tanh %63 : vector<1x128xf32>
    %65 = arith.index_cast %c6_i32 : i32 to index
    %c0_45 = arith.constant 0 : index
    %66 = vector.load %arg6[%65, %c0_45] : memref<8x128xf32, #tpu.memory_space<vmem>>, vector<1x128xf32>
    tpu.vector_store %arg6[%65, %c0_45], %64 {strides = array<i32>} : memref<8x128xf32, #tpu.memory_space<vmem>>, vector<1x128xf32>,
    %c7_i32 = arith.constant 7 : i32
    %67 = arith.index_cast %c7_i32 : i32 to index
    %c0_46 = arith.constant 0 : index
    %68 = vector.load %arg6[%67, %c0_46] : memref<8x128xf32, #tpu.memory_space<vmem>>, vector<1x128xf32>
    %c0_47 = arith.constant 0 : index
    %c0_48 = arith.constant 0 : index
    %69 = vector.load %arg4[%c0_47, %c0_48] : memref<128x128xf32, #tpu.memory_space<vmem>>, vector<128x128xf32>
    %cst_49 = arith.constant dense<0.000000e+00> : vector<1x128xf32>
    %70 = tpu.matmul %64, %69, %cst_49 {dimension_numbers = #tpu.dot_dimension_numbers<[1], [0], [0], [1], [0, 0, 1, 1], [], []>} : vector<1x128xf32>, vector<128x128xf32>, vector<1x128xf32> -> vector<1x128xf32>
    %71 = arith.addf %70, %68 : vector<1x128xf32>
    %72 = math.tanh %71 : vector<1x128xf32>
    %73 = arith.index_cast %c7_i32 : i32 to index
    %c0_50 = arith.constant 0 : index
    %74 = vector.load %arg6[%73, %c0_50] : memref<8x128xf32, #tpu.memory_space<vmem>>, vector<1x128xf32>
    tpu.vector_store %arg6[%73, %c0_50], %72 {strides = array<i32>} : memref<8x128xf32, #tpu.memory_space<vmem>>, vector<1x128xf32>,
    %c8_i32 = arith.constant 8 : i32
    %c0_51 = arith.constant 0 : index
    %c0_52 = arith.constant 0 : index
    %75 = vector.load %arg7[%c0_51, %c0_52] : memref<1x128xf32, #tpu.memory_space<vmem>>, vector<1x128xf32>
    tpu.vector_store %arg7[%c0_51, %c0_52], %72 {strides = array<i32>} : memref<1x128xf32, #tpu.memory_space<vmem>>, vector<1x128xf32>,
    return
  }
  func.func @transform_0(%arg0: i32) -> (i32, i32) {
    %c0_i32 = arith.constant 0 : i32
    %c0_i32_0 = arith.constant 0 : i32
    return %arg0, %c0_i32 : i32, i32
  }
  func.func @transform_1(%arg0: i32) -> (i32, i32) {
    %c0_i32 = arith.constant 0 : i32
    %c0_i32_0 = arith.constant 0 : i32
    %c0_i32_1 = arith.constant 0 : i32
    return %c0_i32, %c0_i32_0 : i32, i32
  }
  func.func @transform_2(%arg0: i32) -> (i32, i32) {
    %c0_i32 = arith.constant 0 : i32
    %c0_i32_0 = arith.constant 0 : i32
    %c0_i32_1 = arith.constant 0 : i32
    return %c0_i32, %c0_i32_0 : i32, i32
  }
  func.func @transform_3(%arg0: i32) -> (i32, i32) {
    %c0_i32 = arith.constant 0 : i32
    %c0_i32_0 = arith.constant 0 : i32
    %c0_i32_1 = arith.constant 0 : i32
    return %c0_i32, %c0_i32_0 : i32, i32
  }
  func.func @transform_4(%arg0: i32) -> (i32, i32) {
    %c0_i32 = arith.constant 0 : i32
    %c0_i32_0 = arith.constant 0 : i32
    %c0_i32_1 = arith.constant 0 : i32
    return %c0_i32, %c0_i32_0 : i32, i32
  }
  func.func @transform_5(%arg0: i32) -> (i32, i32) {
    %c0_i32 = arith.constant 0 : i32
    %c0_i32_0 = arith.constant 0 : i32
    return %arg0, %c0_i32 : i32, i32
  }
}

</mosaic_0001>

<bundles_post_ra>
// kernel: _kfrnn_sequence.1
= control target key start
LH: loop header
LB: loop body
LE: loop exit
PB: predicated region body
PF: predicated region fallthrough
CT: control target
= control target key end

     0   :  { %10 = vsyncpa [#allocation4], 0  ;;  %s1856_s18 = smov 0   ;;  %s2109_s0 = inlined_call_operand.vmem [shape: f32[16,16], index: 0, kind: input, shape index: {}]   ;;  %s2110_s1 = inlined_call_operand.vmem [shape: f32[1,128], index: 1, kind: input, shape index: {}]   ;;  %s2111_s2 = inlined_call_operand.vmem [shape: f32[16,128], index: 2, kind: input, shape index: {}]   ;;  %s2112_s3 = inlined_call_operand.hbm [shape: f32[128,128], index: 3, kind: input, shape index: {}]   ;;  %s2113_s4 = inlined_call_operand.vmem [shape: f32[1,128], index: 4, kind: input, shape index: {}]   ;;  %s2114_s5 = inlined_call_operand.vmem [shape: f32[16,128], index: 5, kind: output, shape index: {}]  }
   0x1 LB: > { %s1862_s19 = sadd.s32 4294967295, %s1818_s18   ;;  %p1107_p0 = scmp.ge.s32.totalorder %s1818_s18, 1  ;;  %s1818_s18 = sphi %s1856_s18, %s16_s18  }
   0x2   : > { %p157_p1 = scmp.lt.s32.totalorder %s1818_s18, 3  ;;  %s1820_s20 = smov [#allocation3]  }
   0x3   : > { %s175_s21 = sshll.u32 %s1820_s20, 4  ;;  %p2115_p4 = scmp.eq.s32.totalorder %s1862_s19, 0  ;;  %s176_s21 = int_to_ptr.vmem [resolvable:$true] %s175_s21 }
   0x4   : > { %p1867_p3 = pnand %p1107_p0, %p157_p1  ;;  %s1780_s26 = scalar_lea.hbm %s2112_s3, 2048 }
   0x5   : > { %p1781_p7 = scmp.ne.s32.totalorder %s2112_s3, %s1780_s26  ;;  %p1787_p11 = scmp.lt.u32.totalorder %s1780_s26, %s2112_s3 }
   0x6   : > { %s2117_s22 = scalar_select %p1867_p3, 1, 0 }
   0x7   : > { %p1744_p5 = pneg %p1867_p3 }
   0x9   : > { %p1876_p6 = pnand %p2115_p4, %p1744_p5 }
   0xb   : > { %p1782_p8 = pneg %p1876_p6 }
   0xd   : > { %p1783_p9 = pnand %p1782_p8, %p1781_p7 }
   0xf   : > { %p1784_p10 = pneg %p1783_p9 }
  0x11   : > { %p1789_p12 = pnand %p1787_p11, %p1784_p10 }
  0x13   : > { %1792 = shalt.err (!%p1789_p12)
}
  0x14   : > { %s1793_s6 = scalar_lea.vmem %s176_s21, 2048  ;;  %p1801_p5 = scmp.lt.s32.totalorder %s176_s21, %s176_s21 }
  0x15   : > { %p1794_p13 = scmp.ne.s32.totalorder %s176_s21, %s1793_s6  ;;  %p1802_p2 = scmp.lt.s32.totalorder %s1793_s6, %s1793_s6 }
  0x17   : > { %p1796_p0 = pnand %p1794_p13, %p1782_p8  ;;  %p1803_p4 = por %p1802_p2, %p1801_p5 }
  0x19   : > { %p1797_p1 = pneg %p1796_p0 }
  0x1b   : > { %p1804_p3 = pnand %p1803_p4, %p1797_p1 }
  0x1d   : > { %1807 = shalt.err (!%p1804_p3)
}
  0x1e   : > { %s1821_s7 = smov 128   ;;  %s1822_s8 = smov 8  }
  0x1f   : > { %1747 = dma.hbm_to_vmem [thread:$0]  (!%p1876_p6), %s2112_s3, 2048, %s176_s21, [#allocation4], %s1821_s7, %s1821_s7, %s1822_s8  }
  0x20   : > { %p2119_p7 = scmp.ne.s32.totalorder %s2117_s22, 0 }
  0x21   : > { %p2120_p9 = scmp.eq.s32.totalorder (!%p2119_p7), %s1862_s19, 0 }
  0x22   : > { %201 = sbr.rel (%p2119_p7) target bundleno = 1887 (0x75f), region = 40 }
  0x29   : > { %1813 = dma.done.wait (%p2120_p9), [#allocation4], 2048   ;;  %p2121_p8 = pmov %p2120_p9 }
  0x2a   : > { %p227_p2 = scmp.lt.s32.totalorder %s1862_s19, 1  ;;  %p2122_p3 = scmp.ne.s32.totalorder %s1862_s19, 0 }
  0x2b   : > { %1815 = vsyncadd (%p2121_p8), [#allocation4], 4294965248  ;;  %v239_v0 = vld [vmem:[%s2110_s1] sm:$0x1] (!%p2122_p3) }
  0x2c   : > { %s228_s11 = scalar_select %p227_p2, %s1862_s19, 1 }
  0x2d   : > { %238 = sbr.rel (%p2122_p3) target bundleno = 52 (0x34), region = 48  ;;  %240 = vst [vmem:[#allocation2] sm:$0x1] (!%p2122_p3), %v239_v0 }
  0x2e   : > { %s1112_s12 = sshll.u32 %s228_s11, 3 }
  0x2f   : > { %s230_s15 = scalar_lea.vmem %s2109_s0, %s1112_s12  ;;  %s1910_s20 = scalar_lea.vmem %s2114_s5, %s1112_s12 }
  0x34 PF: > { %v328_v1 = vld [vmem:[#allocation3] sm:$0xff]  ;;  %v329_v2 = vld [vmem:[#allocation3 + $0x8] sm:$0xff]  ;;  %v330_v3 = vld [vmem:[#allocation3 + $0x10] sm:$0xff]  ;;  %v1823_v4 = vmov 0.0|0.0   ;;  %vm1824_vm0 = vmmov 0   ;;  %v1825_v7 = vmov 0.0  }
  0x35   : > { %1548 = vmatprep.subr.bf16.mxu1 %v1823_v4  ;;  %v1918_v5 = vpack.c.bf16 %v329_v2, %v328_v1  ;;  %v331_v6 = vld [vmem:[#allocation3 + $0x18] sm:$0xff]  ;;  %1545 = vmatprep.subr.bf16.mxu0 %v1823_v4  ;;  %v243_v10 = vld [vmem:[%s2111_s2 + $0x8] sm:$0xff]  ;;  %vm251_vm1 = vcmask 130048   ;;  %v334_v16 = vld [vmem:[#allocation3 + $0x30] sm:$0xff] }
  0x36   : > { %1262 = vmatprep.mubr.msk.f32.mxu0 %vm1824_vm0, %v1825_v7  ;;  %1297 = vmatprep.mubr.msk.f32.mxu1 %vm1824_vm0, %v1825_v7  ;;  %v1926_v8 = vpack.c.bf16 %v331_v6, %v330_v3  ;;  %v242_v9 = vld [vmem:[%s2111_s2] sm:$0xff]  ;;  %v333_v12 = vld [vmem:[#allocation3 + $0x28] sm:$0xff]  ;;  %v338_v22 = vld [vmem:[#allocation3 + $0x50] sm:$0xff] }
  0x37   : > { %1550 = vmatpush3.bf16.msra.mxu1 %v1918_v5  ;;  %v332_v11 = vld [vmem:[#allocation3 + $0x20] sm:$0xff]  ;;  %v1546_v13 = vpack.c.bf16 %v243_v10, %v242_v9  ;;  %v335_v17 = vld [vmem:[#allocation3 + $0x38] sm:$0xff]  ;;  %v337_v20 = vld [vmem:[#allocation3 + $0x48] sm:$0xff] }
  0x38   : > { %1551 = vmatprep.subr.bf16.mxu1 %v1823_v4  ;;  %v241_v14 = vld [vmem:[%s230_s15] sm:$0xff]  ;;  %v1936_v15 = vpack.c.bf16 %v333_v12, %v332_v11  ;;  %v1944_v18 = vpack.c.bf16 %v335_v17, %v334_v16  ;;  %v341_v26 = vld [vmem:[#allocation3 + $0x68] sm:$0xff]  ;;  %v342_v28 = vld [vmem:[#allocation3 + $0x70] sm:$0xff] }
  0x39   : > { %1547 = vmatpush3.bf16.msra.mxu0 %v1546_v13  ;;  %v336_v19 = vld [vmem:[#allocation3 + $0x40] sm:$0xff]  ;;  %v339_v23 = vld [vmem:[#allocation3 + $0x58] sm:$0xff] }
  0x3a   : > { %1572 = vmatprep.subr.bf16.mxu0 %v1823_v4  ;;  %v1950_v21 = vpack.c.bf16 %v337_v20, %v336_v19  ;;  %v1956_v24 = vpack.c.bf16 %v339_v23, %v338_v22  ;;  %v340_v25 = vld [vmem:[#allocation3 + $0x60] sm:$0xff]  ;;  %v343_v29 = vld [vmem:[#allocation3 + $0x78] sm:$0xff] }
  0x3b   : > { %1553 = vmatpush3.bf16.msra.mxu1 %v1926_v8  ;;  %v1962_v27 = vpack.c.bf16 %v341_v26, %v340_v25  ;;  %v1968_v30 = vpack.c.bf16 %v343_v29, %v342_v28  ;;  %v326_v31 = vld [vmem:[#allocation2] sm:$0x1] }
  0x3c   : > { %1554 = vmatprep.subr.bf16.mxu1 %v1823_v4  ;;  %1263 = vmatmul.mubr.msk.f32.vlgmr.msra.gmra.mrb[0].mxu0 %vm251_vm1, %v241_v14  ;;  %v1115_v32 = vld [vmem:[%s2113_s4] ss:$0 sm:$0xff] }
  0x3d   : > { %1574 = vmatpush3.bf16.msra.mxu0 %v1918_v5  ;;  %1332 = vmatprep.mubr.msk.f32.mxu0 %vm1824_vm0, %v1825_v7 }
  0x3e   : > { %1575 = vmatprep.subr.bf16.mxu0 %v1823_v4 }
  0x3f   : > { %1556 = vmatpush3.bf16.msra.mxu1 %v1936_v15 }
  0x40   : > { %1557 = vmatprep.subr.bf16.mxu1 %v1823_v4 }
  0x41   : > { %1577 = vmatpush3.bf16.msra.mxu0 %v1926_v8 }
  0x42   : > { %1578 = vmatprep.subr.bf16.mxu0 %v1823_v4 }
  0x43   : > { %1559 = vmatpush3.bf16.msra.mxu1 %v1944_v18 }
  0x44   : > { %1560 = vmatprep.subr.bf16.mxu1 %v1823_v4 }
  0x45   : > { %1580 = vmatpush3.bf16.msra.mxu0 %v1936_v15 }
  0x46   : > { %1581 = vmatprep.subr.bf16.mxu0 %v1823_v4 }
  0x47   : > { %1562 = vmatpush3.bf16.msra.mxu1 %v1950_v21 }
  0x48   : > { %1563 = vmatprep.subr.bf16.mxu1 %v1823_v4 }
  0x49   : > { %1583 = vmatpush3.bf16.msra.mxu0 %v1944_v18 }
  0x4a   : > { %1584 = vmatprep.subr.bf16.mxu0 %v1823_v4 }
  0x4b   : > { %1565 = vmatpush3.bf16.msra.mxu1 %v1956_v24 }
  0x4c   : > { %1566 = vmatprep.subr.bf16.mxu1 %v1823_v4 }
  0x4d   : > { %1586 = vmatpush3.bf16.msra.mxu0 %v1950_v21 }
  0x4e   : > { %1587 = vmatprep.subr.bf16.mxu0 %v1823_v4 }
  0x4f   : > { %1568 = vmatpush3.bf16.msra.mxu1 %v1962_v27 }
  0x50   : > { %1569 = vmatprep.subr.bf16.mxu1 %v1823_v4 }
  0x51   : > { %1589 = vmatpush3.bf16.msra.mxu0 %v1956_v24 }
  0x52   : > { %1590 = vmatprep.subr.bf16.mxu0 %v1823_v4 }
  0x53   : > { %1571 = vmatpush3.bf16.msra.mxu1 %v1968_v30 }
  0x54   : > { %1596 = vmatprep.subr.bf16.mxu1 %v1823_v4 }
  0x55   : > { %1592 = vmatpush3.bf16.msra.mxu0 %v1962_v27 }
  0x56   : > { %1298 = vmatmul.mubr.f32.vlgmr.msra.gmra.mrb[0].mxu1 %v326_v31  ;;  %1593 = vmatprep.subr.bf16.mxu0 %v1823_v4 }
  0x57   : > { %1598 = vmatpush3.bf16.msra.mxu1 %v1918_v5  ;;  %1367 = vmatprep.mubr.msk.f32.mxu1 %vm1824_vm0, %v1825_v7 }
  0x58   : > { %1599 = vmatprep.subr.bf16.mxu1 %v1823_v4 }
  0x59   : > { %1595 = vmatpush3.bf16.msra.mxu0 %v1968_v30 }
  0x5a   : > { %1620 = vmatprep.subr.bf16.mxu0 %v1823_v4 }
  0x5b   : > { %1601 = vmatpush3.bf16.msra.mxu1 %v1926_v8 }
  0x5c   : > { %1602 = vmatprep.subr.bf16.mxu1 %v1823_v4 }
  0x5f   : > { %1604 = vmatpush3.bf16.msra.mxu1 %v1936_v15 }
  0x60   : > { %1605 = vmatprep.subr.bf16.mxu1 %v1823_v4 }
  0x63   : > { %1607 = vmatpush3.bf16.msra.mxu1 %v1944_v18 }
  0x64   : > { %1608 = vmatprep.subr.bf16.mxu1 %v1823_v4 }
  0x67   : > { %1610 = vmatpush3.bf16.msra.mxu1 %v1950_v21 }
  0x68   : > { %1611 = vmatprep.subr.bf16.mxu1 %v1823_v4 }
  0x6b   : > { %1613 = vmatpush3.bf16.msra.mxu1 %v1956_v24 }
  0x6c   : > { %1614 = vmatprep.subr.bf16.mxu1 %v1823_v4 }
  0x6f   : > { %1616 = vmatpush3.bf16.msra.mxu1 %v1962_v27 }
  0x70   : > { %1617 = vmatprep.subr.bf16.mxu1 %v1823_v4 }
  0x73   : > { %1619 = vmatpush3.bf16.msra.mxu1 %v1968_v30 }
  0x74   : > { %1644 = vmatprep.subr.bf16.mxu1 %v1823_v4 }
 0x10f   : > { %v321_v33 = vpop.f32.mrb[0].mxu0 }
 0x110   : > { %v322_v34 = vadd.f32 %v1115_v32, %v321_v33  ;;  %v1264_v35 = vpop.f32.mrb[1].mxu0 }
 0x112   : > { %325 = vst [vmem:[%s1910_s20] sm:$0xff] %v322_v34 }
 0x119   : > { %v327_v36 = vld [vmem:[%s1910_s20] sm:$0x1]  ;;  %v416_v41 = vld [vmem:[%s1910_s20 + $0x1] sm:$0x1]  ;;  %v505_v46 = vld [vmem:[%s1910_s20 + $0x2] sm:$0x1] }
 0x11a   : > { %v594_v51 = vld [vmem:[%s1910_s20 + $0x3] sm:$0x1]  ;;  %v683_v56 = vld [vmem:[%s1910_s20 + $0x4] sm:$0x1]  ;;  %v772_v61 = vld [vmem:[%s1910_s20 + $0x5] sm:$0x1] }
 0x11b   : > { %v861_v2 = vld [vmem:[%s1910_s20 + $0x6] sm:$0x1] }
 0x129   : > { %v410_v37 = vpop.f32.mrb[0].mxu1 }
 0x12a   : > { %v411_v38 = vadd.f32 %v410_v37, %v327_v36  ;;  %v1299_v39 = vpop.f32.mrb[1].mxu1 }
 0x12c   : > { %1764 = vtanh.f32 %v411_v38 }
 0x136   : > { %v1765_v40 = vpop.eup %1764 }
 0x137   : > { %415 = vst [vmem:[%s1910_s20] sm:$0x1] %v1765_v40  ;;  %1333 = vmatmul.mubr.f32.vlgmr.msra.gmra.mrb[2].mxu0 %v1765_v40 }
 0x138   : > { %1622 = vmatpush3.bf16.msra.mxu0 %v1918_v5  ;;  %1402 = vmatprep.mubr.msk.f32.mxu0 %vm1824_vm0, %v1825_v7 }
 0x139   : > { %1623 = vmatprep.subr.bf16.mxu0 %v1823_v4 }
 0x13c   : > { %1625 = vmatpush3.bf16.msra.mxu0 %v1926_v8 }
 0x13d   : > { %1626 = vmatprep.subr.bf16.mxu0 %v1823_v4 }
 0x140   : > { %1628 = vmatpush3.bf16.msra.mxu0 %v1936_v15 }
 0x141   : > { %1629 = vmatprep.subr.bf16.mxu0 %v1823_v4 }
 0x144   : > { %1631 = vmatpush3.bf16.msra.mxu0 %v1944_v18 }
 0x145   : > { %1632 = vmatprep.subr.bf16.mxu0 %v1823_v4 }
 0x148   : > { %1634 = vmatpush3.bf16.msra.mxu0 %v1950_v21 }
 0x149   : > { %1635 = vmatprep.subr.bf16.mxu0 %v1823_v4 }
 0x14c   : > { %1637 = vmatpush3.bf16.msra.mxu0 %v1956_v24 }
 0x14d   : > { %1638 = vmatprep.subr.bf16.mxu0 %v1823_v4 }
 0x150   : > { %1640 = vmatpush3.bf16.msra.mxu0 %v1962_v27 }
 0x151   : > { %1641 = vmatprep.subr.bf16.mxu0 %v1823_v4 }
 0x154   : > { %1643 = vmatpush3.bf16.msra.mxu0 %v1968_v30 }
 0x155   : > { %1668 = vmatprep.subr.bf16.mxu0 %v1823_v4 }
 0x20a   : > { %v499_v42 = vpop.f32.mrb[2].mxu0 }
 0x20b   : > { %v500_v43 = vadd.f32 %v499_v42, %v416_v41  ;;  %v1334_v44 = vpop.f32.mrb[3].mxu0 }
 0x20d   : > { %1766 = vtanh.f32 %v500_v43 }
 0x217   : > { %v1767_v45 = vpop.eup %1766 }
 0x218   : > { %504 = vst [vmem:[%s1910_s20 + $0x1] sm:$0x1] %v1767_v45  ;;  %1368 = vmatmul.mubr.f32.vlgmr.msra.gmra.mrb[2].mxu1 %v1767_v45 }
 0x219   : > { %1646 = vmatpush3.bf16.msra.mxu1 %v1918_v5  ;;  %1437 = vmatprep.mubr.msk.f32.mxu1 %vm1824_vm0, %v1825_v7 }
 0x21a   : > { %1647 = vmatprep.subr.bf16.mxu1 %v1823_v4 }
 0x21d   : > { %1649 = vmatpush3.bf16.msra.mxu1 %v1926_v8 }
 0x21e   : > { %1650 = vmatprep.subr.bf16.mxu1 %v1823_v4 }
 0x221   : > { %1652 = vmatpush3.bf16.msra.mxu1 %v1936_v15 }
 0x222   : > { %1653 = vmatprep.subr.bf16.mxu1 %v1823_v4 }
 0x225   : > { %1655 = vmatpush3.bf16.msra.mxu1 %v1944_v18 }
 0x226   : > { %1656 = vmatprep.subr.bf16.mxu1 %v1823_v4 }
 0x229   : > { %1658 = vmatpush3.bf16.msra.mxu1 %v1950_v21 }
 0x22a   : > { %1659 = vmatprep.subr.bf16.mxu1 %v1823_v4 }
 0x22d   : > { %1661 = vmatpush3.bf16.msra.mxu1 %v1956_v24 }
 0x22e   : > { %1662 = vmatprep.subr.bf16.mxu1 %v1823_v4 }
 0x231   : > { %1664 = vmatpush3.bf16.msra.mxu1 %v1962_v27 }
 0x232   : > { %1665 = vmatprep.subr.bf16.mxu1 %v1823_v4 }
 0x235   : > { %1667 = vmatpush3.bf16.msra.mxu1 %v1968_v30 }
 0x236   : > { %1692 = vmatprep.subr.bf16.mxu1 %v1823_v4 }
 0x2eb   : > { %v588_v47 = vpop.f32.mrb[2].mxu1 }
 0x2ec   : > { %v589_v48 = vadd.f32 %v588_v47, %v505_v46  ;;  %v1369_v49 = vpop.f32.mrb[3].mxu1 }
 0x2ee   : > { %1768 = vtanh.f32 %v589_v48 }
 0x2f8   : > { %v1769_v50 = vpop.eup %1768 }
 0x2f9   : > { %593 = vst [vmem:[%s1910_s20 + $0x2] sm:$0x1] %v1769_v50  ;;  %1403 = vmatmul.mubr.f32.vlgmr.msra.gmra.mrb[4].mxu0 %v1769_v50 }
 0x2fa   : > { %1670 = vmatpush3.bf16.msra.mxu0 %v1918_v5  ;;  %1472 = vmatprep.mubr.msk.f32.mxu0 %vm1824_vm0, %v1825_v7 }
 0x2fb   : > { %1671 = vmatprep.subr.bf16.mxu0 %v1823_v4 }
 0x2fe   : > { %1673 = vmatpush3.bf16.msra.mxu0 %v1926_v8 }
 0x2ff   : > { %1674 = vmatprep.subr.bf16.mxu0 %v1823_v4 }
 0x302   : > { %1676 = vmatpush3.bf16.msra.mxu0 %v1936_v15 }
 0x303   : > { %1677 = vmatprep.subr.bf16.mxu0 %v1823_v4 }
 0x306   : > { %1679 = vmatpush3.bf16.msra.mxu0 %v1944_v18 }
 0x307   : > { %1680 = vmatprep.subr.bf16.mxu0 %v1823_v4 }
 0x30a   : > { %1682 = vmatpush3.bf16.msra.mxu0 %v1950_v21 }
 0x30b   : > { %1683 = vmatprep.subr.bf16.mxu0 %v1823_v4 }
 0x30e   : > { %1685 = vmatpush3.bf16.msra.mxu0 %v1956_v24 }
 0x30f   : > { %1686 = vmatprep.subr.bf16.mxu0 %v1823_v4 }
 0x312   : > { %1688 = vmatpush3.bf16.msra.mxu0 %v1962_v27 }
 0x313   : > { %1689 = vmatprep.subr.bf16.mxu0 %v1823_v4 }
 0x316   : > { %1691 = vmatpush3.bf16.msra.mxu0 %v1968_v30 }
 0x317   : > { %1716 = vmatprep.subr.bf16.mxu0 %v1823_v4 }
 0x3cc   : > { %v677_v52 = vpop.f32.mrb[4].mxu0 }
 0x3cd   : > { %v678_v53 = vadd.f32 %v677_v52, %v594_v51  ;;  %v1404_v54 = vpop.f32.mrb[5].mxu0 }
 0x3cf   : > { %1770 = vtanh.f32 %v678_v53 }
 0x3d9   : > { %v1771_v55 = vpop.eup %1770 }
 0x3da   : > { %682 = vst [vmem:[%s1910_s20 + $0x3] sm:$0x1] %v1771_v55  ;;  %1438 = vmatmul.mubr.f32.vlgmr.msra.gmra.mrb[4].mxu1 %v1771_v55 }
 0x3db   : > { %1694 = vmatpush3.bf16.msra.mxu1 %v1918_v5  ;;  %1507 = vmatprep.mubr.msk.f32.mxu1 %vm1824_vm0, %v1825_v7 }
 0x3dc   : > { %1695 = vmatprep.subr.bf16.mxu1 %v1823_v4 }
 0x3df   : > { %1697 = vmatpush3.bf16.msra.mxu1 %v1926_v8 }
 0x3e0   : > { %1698 = vmatprep.subr.bf16.mxu1 %v1823_v4 }
 0x3e3   : > { %1700 = vmatpush3.bf16.msra.mxu1 %v1936_v15 }
 0x3e4   : > { %1701 = vmatprep.subr.bf16.mxu1 %v1823_v4 }
 0x3e7   : > { %1703 = vmatpush3.bf16.msra.mxu1 %v1944_v18 }
 0x3e8   : > { %1704 = vmatprep.subr.bf16.mxu1 %v1823_v4 }
 0x3eb   : > { %1706 = vmatpush3.bf16.msra.mxu1 %v1950_v21 }
 0x3ec   : > { %1707 = vmatprep.subr.bf16.mxu1 %v1823_v4 }
 0x3ef   : > { %1709 = vmatpush3.bf16.msra.mxu1 %v1956_v24 }
 0x3f0   : > { %1710 = vmatprep.subr.bf16.mxu1 %v1823_v4 }
 0x3f3   : > { %1712 = vmatpush3.bf16.msra.mxu1 %v1962_v27 }
 0x3f4   : > { %1713 = vmatprep.subr.bf16.mxu1 %v1823_v4 }
 0x3f7   : > { %1715 = vmatpush3.bf16.msra.mxu1 %v1968_v30 }
 0x4ad   : > { %v766_v57 = vpop.f32.mrb[4].mxu1 }
 0x4ae   : > { %v767_v58 = vadd.f32 %v766_v57, %v683_v56  ;;  %v1439_v59 = vpop.f32.mrb[5].mxu1 }
 0x4b0   : > { %1772 = vtanh.f32 %v767_v58 }
 0x4ba   : > { %v1773_v60 = vpop.eup %1772 }
 0x4bb   : > { %771 = vst [vmem:[%s1910_s20 + $0x4] sm:$0x1] %v1773_v60  ;;  %1473 = vmatmul.mubr.f32.vlgmr.msra.gmra.mrb[6].mxu0 %v1773_v60 }
 0x4bc   : > { %1718 = vmatpush3.bf16.msra.mxu0 %v1918_v5  ;;  %1542 = vmatprep.mubr.msk.f32.mxu0 %vm1824_vm0, %v1825_v7 }
 0x4bd   : > { %1719 = vmatprep.subr.bf16.mxu0 %v1823_v4 }
 0x4c0   : > { %1721 = vmatpush3.bf16.msra.mxu0 %v1926_v8 }
 0x4c1   : > { %1722 = vmatprep.subr.bf16.mxu0 %v1823_v4 }
 0x4c4   : > { %1724 = vmatpush3.bf16.msra.mxu0 %v1936_v15 }
 0x4c5   : > { %1725 = vmatprep.subr.bf16.mxu0 %v1823_v4 }
 0x4c8   : > { %1727 = vmatpush3.bf16.msra.mxu0 %v1944_v18 }
 0x4c9   : > { %1728 = vmatprep.subr.bf16.mxu0 %v1823_v4 }
 0x4cc   : > { %1730 = vmatpush3.bf16.msra.mxu0 %v1950_v21 }
 0x4cd   : > { %1731 = vmatprep.subr.bf16.mxu0 %v1823_v4 }
 0x4d0   : > { %1733 = vmatpush3.bf16.msra.mxu0 %v1956_v24 }
 0x4d1   : > { %1734 = vmatprep.subr.bf16.mxu0 %v1823_v4 }
 0x4d4   : > { %1736 = vmatpush3.bf16.msra.mxu0 %v1962_v27 }
 0x4d5   : > { %1737 = vmatprep.subr.bf16.mxu0 %v1823_v4  ;;  %v950_v4 = vld [vmem:[%s1910_s20 + $0x7] sm:$0x1] }
 0x4d8   : > { %1739 = vmatpush3.bf16.msra.mxu0 %v1968_v30 }
 0x58e   : > { %v855_v62 = vpop.f32.mrb[6].mxu0 }
 0x58f   : > { %v856_v63 = vadd.f32 %v855_v62, %v772_v61  ;;  %v1474_v0 = vpop.f32.mrb[7].mxu0 }
 0x591   : > { %1774 = vtanh.f32 %v856_v63 }
 0x59b   : > { %v1775_v1 = vpop.eup %1774 }
 0x59c   : > { %860 = vst [vmem:[%s1910_s20 + $0x5] sm:$0x1] %v1775_v1  ;;  %1508 = vmatmul.mubr.f32.vlgmr.msra.gmra.mrb[6].mxu1 %v1775_v1 }
 0x66f   : > { %v944_v3 = vpop.f32.mrb[6].mxu1 }
 0x670   : > { %v945_v5 = vadd.f32 %v944_v3, %v861_v2  ;;  %v1509_v6 = vpop.f32.mrb[7].mxu1 }
 0x672   : > { %1776 = vtanh.f32 %v945_v5 }
 0x67c   : > { %v1777_v7 = vpop.eup %1776 }
 0x67d   : > { %949 = vst [vmem:[%s1910_s20 + $0x6] sm:$0x1] %v1777_v7  ;;  %1543 = vmatmul.mubr.f32.vlgmr.msra.gmra.mrb[8].mxu0 %v1777_v7 }
 0x750   : > { %v1033_v8 = vpop.f32.mrb[8].mxu0 }
 0x751   : > { %v1034_v9 = vadd.f32 %v1033_v8, %v950_v4  ;;  %v1544_v10 = vpop.f32.mrb[9].mxu0 }
 0x753   : > { %1778 = vtanh.f32 %v1034_v9 }
 0x75d   : > { %v1779_v11 = vpop.eup %1778 }
 0x75e   : > { %1038 = vst [vmem:[%s1910_s20 + $0x7] sm:$0x1] %v1779_v11  ;;  %1039 = vst [vmem:[#allocation2] sm:$0x1] %v1779_v11 }
 0x75f PF: > { %s16_s18 = sadd.s32 1, %s1818_s18  }
 0x760   : > { %p13_p4 = scmp.ge.s32.totalorder %s16_s18, 4  }
 0x762   :  { %15 = sbr.rel (!%p13_p4) target bundleno = 1 (0x1), region = 79 }
 0x769   :  { %1059 = vsyncpa [#allocation4], 1 }
 0x76a   :  { %1061 = vsyncpa [#allocation4 + $0x1], 1 }

</bundles_post_ra>
